<compile_context>
chip_gen: v7x
topology: tpu7x:2x2x1
jax: 0.10.0
libtpu: 0.0.40
codegen_flags: <defaults>
</compile_context>

<pallas_src>
import jax
import jax.numpy as jnp
from jax.experimental import pallas as pl
from jax.experimental.pallas import tpu as pltpu


def _round_up(a, b):
    return ((a + b - 1) // b) * b


def _fused_kernel(xcat_ref, wbd_ref, o_ref):
    # xcat_ref: (2C, TM)  [x1 channels ; x2 channels], M on the lane axis
    # wbd_ref : (2C, 2C)  block-diag([w1, w2]) in (Cout, Cin) layout
    # o_ref   : (2C, TM)  [out1 channels ; out2 channels]
    o_ref[...] = jnp.dot(
        wbd_ref[...], xcat_ref[...],
        preferred_element_type=jnp.float32).astype(o_ref.dtype)


def _split_kernel(x1_ref, x2_ref, w1_ref, w2_ref, o_ref):
    # x1_ref/x2_ref: (C, TM); w1_ref/w2_ref: (C, C) (Cout, Cin); o_ref: (2C, TM)
    C = w1_ref.shape[0]
    out1 = jnp.dot(w1_ref[...], x1_ref[...], preferred_element_type=jnp.float32)
    out2 = jnp.dot(w2_ref[...], x2_ref[...], preferred_element_type=jnp.float32)
    o_ref[:C, :] = out1.astype(o_ref.dtype)
    o_ref[C:, :] = out2.astype(o_ref.dtype)


def skipping_branch(x, w1, w2, stride=2, block_m=4096):
    """x: (N, C, H, W); w1, w2: (C, C, 1, 1) PyTorch Conv2d weights (bias-free)."""
    N, C, H, W = x.shape
    dtype = x.dtype

    # ---- pooling / shift (pure slicing, left to XLA) -----------------------
    pooled1 = x[:, :, ::stride, ::stride]                       # (N, C, Ho, Wo)
    Ho, Wo = pooled1.shape[2], pooled1.shape[3]

    # shift by (1,1) + zero-pad right/bottom + stride-subsample, without
    # materializing the full-size padded tensor: subsample first, pad the
    # tiny (Ho, Wo)-sized result as needed.
    shifted = x[:, :, 1::stride, 1::stride]
    pooled2 = jnp.pad(
        shifted,
        ((0, 0), (0, 0),
         (0, Ho - shifted.shape[2]), (0, Wo - shifted.shape[3])),
    )                                                           # (N, C, Ho, Wo)

    # ---- lane-dense (channels, M) layout, tiled along M --------------------
    M = N * Ho * Wo
    TM = min(block_m, _round_up(M, 128))
    M_pad = _round_up(M, TM)
    grid = (M_pad // TM,)

    itemsize = jnp.dtype(dtype).itemsize
    compiler_params = pltpu.CompilerParams(
        dimension_semantics=("parallel",),
        vmem_limit_bytes=32 * 1024 * 1024,
    )
    cost = pl.CostEstimate(
        flops=4 * M * C * C,
        transcendentals=0,
        bytes_accessed=(4 * C * M + 4 * C * C) * itemsize,
    )

    w1m = w1[:, :, 0, 0].astype(dtype)                          # (Cout, Cin)
    w2m = w2[:, :, 0, 0].astype(dtype)

    if C < 64:
        # Fuse both 1x1 convs: block-diagonal weight, one MXU push per tile.
        xcat = jnp.concatenate([pooled1, pooled2], axis=1)      # (N, 2C, Ho, Wo)
        xcat = jnp.transpose(xcat, (1, 0, 2, 3)).reshape(2 * C, M)
        xcat = jnp.pad(xcat, ((0, 0), (0, M_pad - M)))
        wbd = jnp.zeros((2 * C, 2 * C), dtype=dtype)
        wbd = wbd.at[:C, :C].set(w1m).at[C:, C:].set(w2m)

        out_flat = pl.pallas_call(
            _fused_kernel,
            out_shape=jax.ShapeDtypeStruct((2 * C, M_pad), dtype),
            grid=grid,
            in_specs=[
                pl.BlockSpec((2 * C, TM), lambda i: (0, i)),
                pl.BlockSpec((2 * C, 2 * C), lambda i: (0, 0)),   # VMEM-resident
            ],
            out_specs=pl.BlockSpec((2 * C, TM), lambda i: (0, i)),
            compiler_params=compiler_params,
            cost_estimate=cost,
        )(xcat, wbd)
    else:
        # Large C: two separate dots (block-diag would waste half the MXU).
        x1f = jnp.transpose(pooled1, (1, 0, 2, 3)).reshape(C, M)
        x2f = jnp.transpose(pooled2, (1, 0, 2, 3)).reshape(C, M)
        x1f = jnp.pad(x1f, ((0, 0), (0, M_pad - M)))
        x2f = jnp.pad(x2f, ((0, 0), (0, M_pad - M)))

        out_flat = pl.pallas_call(
            _split_kernel,
            out_shape=jax.ShapeDtypeStruct((2 * C, M_pad), dtype),
            grid=grid,
            in_specs=[
                pl.BlockSpec((C, TM), lambda i: (0, i)),
                pl.BlockSpec((C, TM), lambda i: (0, i)),
                pl.BlockSpec((C, C), lambda i: (0, 0)),           # VMEM-resident
                pl.BlockSpec((C, C), lambda i: (0, 0)),
            ],
            out_specs=pl.BlockSpec((2 * C, TM), lambda i: (0, i)),
            compiler_params=compiler_params,
            cost_estimate=cost,
        )(x1f, x2f, w1m, w2m)

    # (2C, M_pad) -> (N, 2C, Ho, Wo)
    out = out_flat[:, :M].reshape(2 * C, N, Ho, Wo)
    return jnp.transpose(out, (1, 0, 2, 3))


def _reference(x, w1, w2, stride=2):
    """Pure-JAX reference mirroring the PyTorch forward."""
    pooled1 = x[:, :, ::stride, ::stride]
    shift_x = jnp.pad(x[:, :, 1:, 1:], ((0, 0), (0, 0), (0, 1), (0, 1)))
    pooled2 = shift_x[:, :, ::stride, ::stride]
    out1 = jnp.einsum('nchw,oc->nohw', pooled1, w1[:, :, 0, 0])
    out2 = jnp.einsum('nchw,oc->nohw', pooled2, w2[:, :, 0, 0])
    return jnp.concatenate([out1, out2], axis=1)


if __name__ == "__main__":
    key = jax.random.PRNGKey(0)
    k_x, k_w1, k_w2 = jax.random.split(key, 3)

    N, C, H, W = 2, 4, 16, 16
    x = jax.random.normal(k_x, (N, C, H, W), dtype=jnp.float32)
    # Conv2d(inplanes, inplanes, 1, bias=False) weights: (C, C, 1, 1)
    w1 = jax.random.normal(k_w1, (C, C, 1, 1), dtype=jnp.float32) * 0.1
    w2 = jax.random.normal(k_w2, (C, C, 1, 1), dtype=jnp.float32) * 0.1

    out = jax.jit(skipping_branch)(x, w1, w2)
    out = jax.block_until_ready(out)

    ref = _reference(x, w1, w2, stride=2)
    assert out.shape == (N, 2 * C, H // 2, W // 2), out.shape
    assert jnp.allclose(out, ref, atol=1e-5, rtol=1e-5), "mismatch vs reference"

    print("KERNEL_OK")
</pallas_src>

<mosaic_0001>
module attributes {stable_mosaic.version = 11 : i64} {
  func.func @_fused_kernel(%arg0: i32, %arg1: memref<8x128xf32, #tpu.memory_space<vmem>>, %arg2: memref<8x8xf32, #tpu.memory_space<vmem>>, %arg3: memref<8x128xf32, #tpu.memory_space<vmem>>) attributes {dimension_semantics = [#tpu.dimension_semantics<parallel>], iteration_bounds = array<i64: 1>, scalar_prefetch = 0 : i64, scratch_operands = 0 : i64, tpu.core_type = #tpu.core_type<tc>, window_params = [{transform_indices = @transform_0, window_bounds = array<i64: 8, 128>}, {pipeline_mode = #tpu.pipeline_mode<synchronous>, transform_indices = @transform_1, window_bounds = array<i64: 8, 8>}, {transform_indices = @transform_2, window_bounds = array<i64: 8, 128>}]} {
    %c0 = arith.constant 0 : index
    %c0_0 = arith.constant 0 : index
    %0 = vector.load %arg2[%c0, %c0_0] : memref<8x8xf32, #tpu.memory_space<vmem>>, vector<8x8xf32>
    %c0_1 = arith.constant 0 : index
    %c0_2 = arith.constant 0 : index
    %1 = vector.load %arg1[%c0_1, %c0_2] : memref<8x128xf32, #tpu.memory_space<vmem>>, vector<8x128xf32>
    %cst = arith.constant dense<0.000000e+00> : vector<8x128xf32>
    %2 = tpu.matmul %0, %1, %cst {dimension_numbers = #tpu.dot_dimension_numbers<[1], [0], [0], [1], [0, 0, 1, 1], [], []>} : vector<8x8xf32>, vector<8x128xf32>, vector<8x128xf32> -> vector<8x128xf32>
    %c0_3 = arith.constant 0 : index
    %c0_4 = arith.constant 0 : index
    %3 = vector.load %arg3[%c0_3, %c0_4] : memref<8x128xf32, #tpu.memory_space<vmem>>, vector<8x128xf32>
    tpu.vector_store %arg3[%c0_3, %c0_4], %2 {strides = array<i32>} : memref<8x128xf32, #tpu.memory_space<vmem>>, vector<8x128xf32>,
    return
  }
  func.func @transform_0(%arg0: i32) -> (i32, i32) {
    %c0_i32 = arith.constant 0 : i32
    %c0_i32_0 = arith.constant 0 : i32
    return %c0_i32, %arg0 : i32, i32
  }
  func.func @transform_1(%arg0: i32) -> (i32, i32) {
    %c0_i32 = arith.constant 0 : i32
    %c0_i32_0 = arith.constant 0 : i32
    %c0_i32_1 = arith.constant 0 : i32
    return %c0_i32, %c0_i32_0 : i32, i32
  }
  func.func @transform_2(%arg0: i32) -> (i32, i32) {
    %c0_i32 = arith.constant 0 : i32
    %c0_i32_0 = arith.constant 0 : i32
    return %c0_i32, %arg0 : i32, i32
  }
}

</mosaic_0001>

<bundles_post_ra>
// kernel: skipping_branch.1
= control target key start
LH: loop header
LB: loop body
LE: loop exit
PB: predicated region body
PF: predicated region fallthrough
CT: control target
= control target key end

     0   :  { %vm13_vm0 = vcmask 64512   ;;  %v102_v0 = vmov 0.0   ;;  %vm103_vm1 = vmmov 0   ;;  %s128_s0 = inlined_call_operand.vmem [shape: f32[8,128], index: 0, kind: input, shape index: {}]   ;;  %s129_s1 = inlined_call_operand.vmem [shape: f32[8,8], index: 1, kind: input, shape index: {}]   ;;  %s130_s2 = inlined_call_operand.vmem [shape: f32[8,128], index: 2, kind: output, shape index: {}]  }
   0x1   :  { %95 = vmatprep.subr.mxu0 %v102_v0  ;;  %v12_v1 = vld [vmem:[%s128_s0] sm:$0xff]  ;;  %97 = vmatprep.mubr.msk.f32.mxu0 %vm103_vm1, %v102_v0 }
   0x2   :  { %v11_v2 = vld [vmem:[%s129_s1] sm:$0xff]  ;;  %96 = vmatpush3.msra.mxu0 %v12_v1 }
   0x3   :  { %98 = vmatmul.mubr.msk.f32.vlgmr.msra.gmra.mrb[0].mxu0 %vm13_vm0, %v11_v2 }
  0xd6   :  { %v83_v3 = vpop.f32.mrb[0].mxu0 }
  0xd7   :  { %87 = vst [vmem:[%s130_s2] sm:$0xff] %v83_v3  ;;  %v99_v4 = vpop.f32.mrb[1].mxu0 }

</bundles_post_ra>
